<compile_context>
chip_gen: v7x
topology: tpu7x:2x2x1
jax: 0.10.0
libtpu: 0.0.40
codegen_flags: <defaults>
</compile_context>

<pallas_src>
import functools

import jax
import jax.numpy as jnp
from jax.experimental import pallas as pl
from jax.experimental.pallas import tpu as pltpu


def _round_up(x, m):
    return (x + m - 1) // m * m


def _largest_tile(n, cap):
    """Largest t in {cap, cap/2, ..., 256} that divides n (n multiple of 256)."""
    t = cap
    while t > 256 and (n % t != 0):
        t //= 2
    return min(t, n)


# --------------------------------------------------------------------------
# Kernel 1: feature projection  xw = h @ W   (reassociated GraphConv)
# --------------------------------------------------------------------------
def _feat_proj_kernel(h_ref, w_ref, xw_ref):
    xw_ref[...] = jnp.dot(
        h_ref[...], w_ref[...], preferred_element_type=jnp.float32
    ).astype(xw_ref.dtype)


# --------------------------------------------------------------------------
# Kernel 2: fused  A_norm @ xw + b  ->  GRUCell  ->  ELU
# --------------------------------------------------------------------------
def _rec_gcn_kernel(a_ref, xw_ref, hprev_ref, gcnb_ref,
                    wih_ref, bih_ref, whh_ref, bhh_ref,
                    out_ref, *, hp, tk, xw_resident):
    k = pl.program_id(1)

    @pl.when(k == 0)
    def _():
        out_ref[...] = jnp.zeros_like(out_ref)

    if xw_resident:
        # xw is fully resident in VMEM; slice the current K slab in-kernel.
        start = pl.multiple_of(k * tk, tk)
        xw_k = xw_ref[pl.ds(start, tk), :]
    else:
        xw_k = xw_ref[...]

    # Streamed reduction over the node (K) axis of the adjacency (bf16 MXU,
    # f32 accumulation directly into the k-invariant f32 output block).
    out_ref[...] += jnp.dot(a_ref[...], xw_k,
                            preferred_element_type=jnp.float32)

    @pl.when(k == pl.num_programs(1) - 1)
    def _():
        x = out_ref[...] + gcnb_ref[...]                  # (TM, Hp) f32
        h_prev = hprev_ref[...].astype(jnp.float32)       # (TM, Hp) f32

        gi = jnp.dot(x.astype(jnp.bfloat16), wih_ref[...],
                     preferred_element_type=jnp.float32) + bih_ref[...]
        gh = jnp.dot(hprev_ref[...], whh_ref[...],
                     preferred_element_type=jnp.float32) + bhh_ref[...]

        # 128-aligned gate slices (gates laid out at Hp-multiples).
        r = jax.nn.sigmoid(gi[:, 0 * hp:1 * hp] + gh[:, 0 * hp:1 * hp])
        z = jax.nn.sigmoid(gi[:, 1 * hp:2 * hp] + gh[:, 1 * hp:2 * hp])
        n = jnp.tanh(gi[:, 2 * hp:3 * hp] + r * gh[:, 2 * hp:3 * hp])
        h_new = (1.0 - z) * n + z * h_prev

        # ELU (alpha = 1); expm1 for precision near zero.
        out_ref[...] = jnp.where(h_new > 0.0, h_new,
                                 jnp.expm1(h_new)).astype(out_ref.dtype)


# --------------------------------------------------------------------------
# Padding helpers
# --------------------------------------------------------------------------
def _pad2(x, rows, cols, dtype=jnp.float32):
    out = jnp.zeros((rows, cols), dtype)
    return out.at[:x.shape[0], :x.shape[1]].set(x.astype(dtype))


def _pad_gru_weight(w, h, hp):
    """PyTorch GRU weight (3H, H) -> padded transpose (Hp, 3*Hp), gate g at
    columns [g*Hp, g*Hp+H)."""
    wt = w.T.astype(jnp.float32)                          # (H, 3H)
    out = jnp.zeros((hp, 3 * hp), jnp.float32)
    for g in range(3):
        out = out.at[:h, g * hp:g * hp + h].set(wt[:, g * h:(g + 1) * h])
    return out


def _pad_gru_bias(b, h, hp):
    out = jnp.zeros((1, 3 * hp), jnp.float32)
    for g in range(3):
        out = out.at[0, g * hp:g * hp + h].set(b[g * h:(g + 1) * h])
    return out


# --------------------------------------------------------------------------
# Wrapper: RecGCNblock.forward
# --------------------------------------------------------------------------
def rec_gcn_block(a_norm, h, params, first_cell=False):
    """JAX/Pallas equivalent of RecGCNblock.forward.

    a_norm : (N, N) dense symmetric-normalized adjacency (DGL norm='both')
    h      : (N, in_feats) node features
    """
    n_nodes, in_feats = h.shape
    hidden = params["gcn_w"].shape[1]

    # --- tiling / padding -------------------------------------------------
    # Pad N only to a multiple of 256 (<= 255 wasted rows), then choose tiles
    # as divisors of the padded N:
    #   tk: up to 2048 (big contiguous K slabs of A), tm: up to 512.
    np_ = _round_up(n_nodes, 256)
    tk = _largest_tile(np_, 2048)
    tm = _largest_tile(np_, 512)
    # v7x has 2 TensorCores: keep at least 2 tiles on the parallel row axis.
    if np_ // tm < 2 and tm > 128:
        tm //= 2

    fp = _round_up(in_feats, 128)
    hp = _round_up(hidden, 128)

    f32, bf16 = jnp.float32, jnp.bfloat16

    # Padded / bf16 operands.
    a_p = _pad2(a_norm, np_, np_, f32).astype(bf16)
    h_p = _pad2(h, np_, fp, f32).astype(bf16)
    w_p = _pad2(params["gcn_w"], fp, hp, f32).astype(bf16)
    gcn_b = jnp.zeros((1, hp), f32).at[0, :hidden].set(params["gcn_b"])

    wih_t = _pad_gru_weight(params["gru_w_ih"], hidden, hp).astype(bf16)
    whh_t = _pad_gru_weight(params["gru_w_hh"], hidden, hp).astype(bf16)
    bih = _pad_gru_bias(params["gru_b_ih"], hidden, hp)
    bhh = _pad_gru_bias(params["gru_b_hh"], hidden, hp)

    if first_cell:
        h_prev = jnp.zeros((np_, hp), bf16)
    else:
        assert in_feats == hidden, "non-first cell requires in_feats == out_feats"
        h_prev = _pad2(h, np_, hp, f32).astype(bf16)

    # ---- kernel 1: xw = h @ W (1-2 large grid steps) ----
    tm_proj = _largest_tile(np_, 4096)
    while tm_proj > 256 and tm_proj * (fp + hp) * 2 * 2 > (8 << 20):
        tm_proj //= 2

    xw = pl.pallas_call(
        _feat_proj_kernel,
        out_shape=jax.ShapeDtypeStruct((np_, hp), bf16),
        grid_spec=pltpu.PrefetchScalarGridSpec(
            num_scalar_prefetch=0,
            grid=(np_ // tm_proj,),
            in_specs=[
                pl.BlockSpec((tm_proj, fp), lambda i: (i, 0)),
                pl.BlockSpec((fp, hp), lambda i: (0, 0)),      # resident weight
            ],
            out_specs=pl.BlockSpec((tm_proj, hp), lambda i: (i, 0)),
        ),
        compiler_params=pltpu.CompilerParams(
            dimension_semantics=("parallel",),
            vmem_limit_bytes=32 * 1024 * 1024,
        ),
    )(h_p, w_p)

    # ---- kernel 2: fused A @ xw + b -> GRU -> ELU ----
    # Keep xw fully resident in VMEM unless it is large (> 8 MiB bf16).
    xw_resident = (np_ * hp * 2) <= (8 << 20)
    if xw_resident:
        xw_spec = pl.BlockSpec((np_, hp), lambda i, k: (0, 0))   # resident
    else:
        xw_spec = pl.BlockSpec((tk, hp), lambda i, k: (k, 0))    # streamed slab

    kernel = functools.partial(_rec_gcn_kernel, hp=hp, tk=tk,
                               xw_resident=xw_resident)
    out_p = pl.pallas_call(
        kernel,
        out_shape=jax.ShapeDtypeStruct((np_, hp), f32),
        grid_spec=pltpu.PrefetchScalarGridSpec(
            num_scalar_prefetch=0,
            grid=(np_ // tm, np_ // tk),
            in_specs=[
                pl.BlockSpec((tm, tk), lambda i, k: (i, k)),        # A tile
                xw_spec,                                            # xw
                pl.BlockSpec((tm, hp), lambda i, k: (i, 0)),        # h_prev rows
                pl.BlockSpec((1, hp), lambda i, k: (0, 0)),         # gcn bias
                pl.BlockSpec((hp, 3 * hp), lambda i, k: (0, 0)),    # W_ih^T
                pl.BlockSpec((1, 3 * hp), lambda i, k: (0, 0)),     # b_ih
                pl.BlockSpec((hp, 3 * hp), lambda i, k: (0, 0)),    # W_hh^T
                pl.BlockSpec((1, 3 * hp), lambda i, k: (0, 0)),     # b_hh
            ],
            out_specs=pl.BlockSpec((tm, hp), lambda i, k: (i, 0)),
        ),
        compiler_params=pltpu.CompilerParams(
            dimension_semantics=("parallel", "arbitrary"),
            vmem_limit_bytes=32 * 1024 * 1024,
        ),
    )(a_p, xw, h_prev, gcn_b, wih_t, bih, whh_t, bhh)

    return out_p[:n_nodes, :hidden]


# --------------------------------------------------------------------------
# Test glue
# --------------------------------------------------------------------------
def make_normalized_adjacency(key, n_nodes):
    """Deterministic random undirected graph + self loops, norm='both'."""
    a = (jax.random.uniform(key, (n_nodes, n_nodes)) > 0.7).astype(jnp.float32)
    a = jnp.maximum(a, a.T)                       # symmetrize
    a = jnp.maximum(a, jnp.eye(n_nodes))          # self loops -> no zero degree
    deg = a.sum(axis=1)
    d_inv_sqrt = 1.0 / jnp.sqrt(deg)
    return a * d_inv_sqrt[:, None] * d_inv_sqrt[None, :]


def init_params(key, in_feats, out_feats):
    k = jax.random.split(key, 5)
    bound_w = jnp.sqrt(6.0 / (in_feats + out_feats))        # xavier (DGL default)
    gcn_w = jax.random.uniform(k[0], (in_feats, out_feats), jnp.float32,
                               -bound_w, bound_w)
    gcn_b = jnp.zeros((out_feats,), jnp.float32)
    s = 1.0 / jnp.sqrt(out_feats)                            # PyTorch GRU default
    gru_w_ih = jax.random.uniform(k[1], (3 * out_feats, out_feats), jnp.float32, -s, s)
    gru_w_hh = jax.random.uniform(k[2], (3 * out_feats, out_feats), jnp.float32, -s, s)
    gru_b_ih = jax.random.uniform(k[3], (3 * out_feats,), jnp.float32, -s, s)
    gru_b_hh = jax.random.uniform(k[4], (3 * out_feats,), jnp.float32, -s, s)
    return dict(gcn_w=gcn_w, gcn_b=gcn_b, gru_w_ih=gru_w_ih, gru_w_hh=gru_w_hh,
                gru_b_ih=gru_b_ih, gru_b_hh=gru_b_hh)


def _reference(a_norm, h, params, first_cell=False):
    """Pure-JAX f32 reference mirroring the PyTorch forward."""
    hidden = params["gcn_w"].shape[1]
    x = a_norm @ (h @ params["gcn_w"]) + params["gcn_b"]
    h_prev = jnp.zeros((h.shape[0], hidden), jnp.float32) if first_cell else h
    gi = x @ params["gru_w_ih"].T + params["gru_b_ih"]
    gh = h_prev @ params["gru_w_hh"].T + params["gru_b_hh"]
    i_r, i_z, i_n = jnp.split(gi, 3, axis=1)
    h_r, h_z, h_n = jnp.split(gh, 3, axis=1)
    r = jax.nn.sigmoid(i_r + h_r)
    z = jax.nn.sigmoid(i_z + h_z)
    n = jnp.tanh(i_n + r * h_n)
    h_new = (1.0 - z) * n + z * h_prev
    return jax.nn.elu(h_new)


if __name__ == "__main__":
    key = jax.random.PRNGKey(0)
    in_feats = 64
    out_feats = 64       # in == out so the recurrent (non-first) path is valid

    # n=200 -> pads to 256 (single K step, 2 row tiles);
    # n=600 -> pads to 768 (tm=256, tk=256 -> real (3, 3) tiled reduction).
    for n_nodes in (200, 600):
        k_graph, k_feat, k_param = jax.random.split(
            jax.random.fold_in(key, n_nodes), 3)

        a_norm = make_normalized_adjacency(k_graph, n_nodes)
        h = jax.random.normal(k_feat, (n_nodes, in_feats), jnp.float32)
        params = init_params(k_param, in_feats, out_feats)

        for first_cell in (True, False):
            out = rec_gcn_block(a_norm, h, params, first_cell=first_cell)
            jax.block_until_ready(out)
            ref = _reference(a_norm, h, params, first_cell=first_cell)
            # bf16 MXU inputs (f32 accumulation) vs f32 reference -> bf16 tol.
            assert jnp.allclose(out, ref, atol=5e-2, rtol=5e-2), (
                n_nodes, first_cell, float(jnp.max(jnp.abs(out - ref))))

    print("KERNEL_OK")
</pallas_src>

<mosaic_0001>
module attributes {stable_mosaic.version = 11 : i64} {
  func.func @_feat_proj_kernel(%arg0: i32, %arg1: memref<256x128xbf16, #tpu.memory_space<vmem>>, %arg2: memref<128x128xbf16, #tpu.memory_space<vmem>>, %arg3: memref<256x128xbf16, #tpu.memory_space<vmem>>) attributes {dimension_semantics = [#tpu.dimension_semantics<parallel>], iteration_bounds = array<i64: 1>, scalar_prefetch = 0 : i64, scratch_operands = 0 : i64, tpu.core_type = #tpu.core_type<tc>, window_params = [{transform_indices = @transform_0, window_bounds = array<i64: 256, 128>}, {pipeline_mode = #tpu.pipeline_mode<synchronous>, transform_indices = @transform_1, window_bounds = array<i64: 128, 128>}, {transform_indices = @transform_2, window_bounds = array<i64: 256, 128>}]} {
    %c0 = arith.constant 0 : index
    %c0_0 = arith.constant 0 : index
    %0 = vector.load %arg1[%c0, %c0_0] : memref<256x128xbf16, #tpu.memory_space<vmem>>, vector<256x128xbf16>
    %c0_1 = arith.constant 0 : index
    %c0_2 = arith.constant 0 : index
    %1 = vector.load %arg2[%c0_1, %c0_2] : memref<128x128xbf16, #tpu.memory_space<vmem>>, vector<128x128xbf16>
    %cst = arith.constant dense<0.000000e+00> : vector<256x128xf32>
    %2 = tpu.matmul %0, %1, %cst {dimension_numbers = #tpu.dot_dimension_numbers<[1], [0], [0], [1], [0, 0, 1, 1], [], []>} : vector<256x128xbf16>, vector<128x128xbf16>, vector<256x128xf32> -> vector<256x128xf32>
    %3 = arith.truncf %2 : vector<256x128xf32> to vector<256x128xbf16>
    %c0_3 = arith.constant 0 : index
    %c0_4 = arith.constant 0 : index
    %4 = vector.load %arg3[%c0_3, %c0_4] : memref<256x128xbf16, #tpu.memory_space<vmem>>, vector<256x128xbf16>
    tpu.vector_store %arg3[%c0_3, %c0_4], %3 {strides = array<i32>} : memref<256x128xbf16, #tpu.memory_space<vmem>>, vector<256x128xbf16>,
    return
  }
  func.func @transform_0(%arg0: i32) -> (i32, i32) {
    %c0_i32 = arith.constant 0 : i32
    %c0_i32_0 = arith.constant 0 : i32
    return %arg0, %c0_i32 : i32, i32
  }
  func.func @transform_1(%arg0: i32) -> (i32, i32) {
    %c0_i32 = arith.constant 0 : i32
    %c0_i32_0 = arith.constant 0 : i32
    %c0_i32_1 = arith.constant 0 : i32
    return %c0_i32, %c0_i32_0 : i32, i32
  }
  func.func @transform_2(%arg0: i32) -> (i32, i32) {
    %c0_i32 = arith.constant 0 : i32
    %c0_i32_0 = arith.constant 0 : i32
    return %arg0, %c0_i32 : i32, i32
  }
}

</mosaic_0001>

<bundles_post_ra>
// kernel: tpu_custom_call.1
= control target key start
LH: loop header
LB: loop body
LE: loop exit
PB: predicated region body
PF: predicated region fallthrough
CT: control target
= control target key end

     0   :  { %7 = vsyncpa [#allocation3], 0  ;;  %s1009_s0 = inlined_call_operand.hbm [shape: bf16[256,128], index: 0, kind: input, shape index: {}]   ;;  %s1010_s1 = inlined_call_operand.hbm [shape: bf16[128,128], index: 1, kind: input, shape index: {}]   ;;  %s1011_s2 = inlined_call_operand.hbm [shape: bf16[256,128], index: 2, kind: output, shape index: {}]  }
   0x1   :  { %8 = vsyncpa [#allocation6], 0 }
   0x2   :  { %9 = vsyncpa [#allocation4], 0  ;;  %s944_s9 = smov [#allocation2]   ;;  %s872_s13 = scalar_lea.hbm %s1009_s0, 2048 }
   0x3   :  { %s15_s10 = sshll.u32 %s944_s9, 4  ;;  %p873_p0 = scmp.ne.s32.totalorder %s1009_s0, %s872_s13  ;;  %s16_s10 = int_to_ptr.vmem [resolvable:$true] %s15_s10 }
   0x4   :  { %p876_p1 = scmp.lt.u32.totalorder %s872_s13, %s1009_s0 }
   0x6   :  { %p878_p2 = pnand %p876_p1, %p873_p0 }
   0x8   :  { %881 = shalt.err (!%p878_p2)
}
   0x9   :  { %s882_s18 = scalar_lea.vmem %s16_s10, 2048  ;;  %p887_p4 = scmp.lt.s32.totalorder %s16_s10, %s16_s10 }
   0xa   :  { %p883_p3 = scmp.ne.s32.totalorder %s16_s10, %s882_s18  ;;  %p888_p5 = scmp.lt.s32.totalorder %s882_s18, %s882_s18 }
   0xc   :  { %p889_p6 = por %p888_p5, %p887_p4 }
   0xe   :  { %p890_p7 = pnand %p889_p6, %p883_p3 }
  0x10   :  { %893 = shalt.err (!%p890_p7)
}
  0x11   :  { %s945_s19 = smov 64   ;;  %s946_s20 = smov 4  }
  0x12   :  { %21 = dma.hbm_to_vmem [thread:$0]  %s1009_s0, 2048, %s16_s10, [#allocation3], %s945_s19, %s945_s19, %s946_s20  }
  0x13   :  { %s947_s23 = smov [#allocation5]   ;;  %s894_s27 = scalar_lea.hbm %s1010_s1, 1024 }
  0x14   :  { %s27_s24 = sshll.u32 %s947_s23, 4  ;;  %p895_p8 = scmp.ne.s32.totalorder %s1010_s1, %s894_s27  ;;  %s28_s24 = int_to_ptr.vmem [resolvable:$true] %s27_s24 }
  0x15   :  { %p898_p9 = scmp.lt.u32.totalorder %s894_s27, %s1010_s1 }
  0x17   :  { %p900_p10 = pnand %p898_p9, %p895_p8 }
  0x19   :  { %903 = shalt.err (!%p900_p10)
}
  0x1a   :  { %s904_s4 = scalar_lea.vmem %s28_s24, 1024  ;;  %p909_p12 = scmp.lt.s32.totalorder %s28_s24, %s28_s24 }
  0x1b   :  { %p905_p11 = scmp.ne.s32.totalorder %s28_s24, %s904_s4  ;;  %p910_p13 = scmp.lt.s32.totalorder %s904_s4, %s904_s4 }
  0x1d   :  { %p911_p0 = por %p910_p13, %p909_p12 }
  0x1f   :  { %p912_p1 = pnand %p911_p0, %p905_p11 }
  0x21   :  { %915 = shalt.err (!%p912_p1)
}
  0x22   :  { %33 = dma.hbm_to_vmem [thread:$0]  %s1010_s1, 1024, %s28_s24, [#allocation6], %s945_s19, %s945_s19, %s946_s20  }
  0x23   :  { %938 = dma.done.wait [#allocation3], 2048  }
  0x24   :  { %939 = vsyncadd [#allocation3], 4294965248 }
  0x25   :  { %940 = dma.done.wait [#allocation6], 1024  }
  0x26   :  { %941 = vsyncadd [#allocation6], 4294966272  ;;  %v848_v0 = vld [vmem:[#allocation5] sm:$0xff]   ;;  %v849_v1 = vld [vmem:[#allocation5 + $0x8] sm:$0xff]   ;;  %s948_s1 = smov [#allocation7]  }
  0x27   :  { %779 = vmatprep.subr.bf16.mxu0 %v848_v0  ;;  %827 = vmatprep.subr.bf16.mxu1 %v848_v0  ;;  %v850_v2 = vld [vmem:[#allocation5 + $0x10] sm:$0xff]   ;;  %v851_v3 = vld [vmem:[#allocation5 + $0x18] sm:$0xff]   ;;  %v856_v4 = vld [vmem:[#allocation2] sm:$0xff]   ;;  %s559_s6 = sshll.u32 %s948_s1, 4  ;;  %s560_s6 = int_to_ptr.vmem [resolvable:$true] %s559_s6 }
  0x28   :  { %780 = vmatpush3.bf16.msra.mxu0 %v848_v0  ;;  %835 = vmatpush3.bf16.msra.mxu1 %v848_v0  ;;  %v857_v5 = vld [vmem:[#allocation2 + $0x40] sm:$0xff]   ;;  %v853_v7 = vld [vmem:[#allocation5 + $0x28] sm:$0xff]   ;;  %v854_v8 = vld [vmem:[#allocation5 + $0x30] sm:$0xff]   ;;  %s916_s7 = scalar_lea.vmem %s560_s6, 2048  ;;  %p921_p3 = scmp.lt.s32.totalorder %s560_s6, %s560_s6 }
  0x29   :  { %781 = vmatprep.subr.bf16.mxu0 %v849_v1  ;;  %828 = vmatprep.subr.bf16.mxu1 %v849_v1  ;;  %v852_v6 = vld [vmem:[#allocation5 + $0x20] sm:$0xff]   ;;  %v855_v9 = vld [vmem:[#allocation5 + $0x38] sm:$0xff]   ;;  %v858_v10 = vld [vmem:[#allocation2 + $0x8] sm:$0xff]   ;;  %p917_p2 = scmp.ne.s32.totalorder %s560_s6, %s916_s7  ;;  %p922_p4 = scmp.lt.s32.totalorder %s916_s7, %s916_s7 }
  0x2a   :  { %795 = vmatprep.mubr.bf16.mxu0 %v856_v4  ;;  %811 = vmatprep.mubr.bf16.mxu1 %v857_v5  ;;  %v859_v11 = vld [vmem:[#allocation2 + $0x48] sm:$0xff]   ;;  %v860_v12 = vld [vmem:[#allocation2 + $0x10] sm:$0xff]   ;;  %v862_v14 = vld [vmem:[#allocation2 + $0x18] sm:$0xff]  }
  0x2b   :  { %v861_v13 = vld [vmem:[#allocation2 + $0x50] sm:$0xff]   ;;  %v863_v15 = vld [vmem:[#allocation2 + $0x58] sm:$0xff]   ;;  %v864_v16 = vld [vmem:[#allocation2 + $0x20] sm:$0xff]   ;;  %p923_p5 = por %p922_p4, %p921_p3 }
  0x2c   :  { %782 = vmatpush3.bf16.msra.mxu0 %v849_v1  ;;  %836 = vmatpush3.bf16.msra.mxu1 %v849_v1  ;;  %v865_v17 = vld [vmem:[#allocation2 + $0x60] sm:$0xff]   ;;  %v866_v18 = vld [vmem:[#allocation2 + $0x28] sm:$0xff]   ;;  %v868_v20 = vld [vmem:[#allocation2 + $0x30] sm:$0xff]  }
  0x2d   :  { %783 = vmatprep.subr.bf16.mxu0 %v850_v2  ;;  %829 = vmatprep.subr.bf16.mxu1 %v850_v2  ;;  %v867_v19 = vld [vmem:[#allocation2 + $0x68] sm:$0xff]   ;;  %v869_v21 = vld [vmem:[#allocation2 + $0x70] sm:$0xff]   ;;  %v870_v22 = vld [vmem:[#allocation2 + $0x38] sm:$0xff]   ;;  %p924_p6 = pnand %p923_p5, %p917_p2 }
  0x2e   :  { %v871_v23 = vld [vmem:[#allocation2 + $0x78] sm:$0xff]  }
  0x30   :  { %784 = vmatpush3.bf16.msra.mxu0 %v850_v2  ;;  %837 = vmatpush3.bf16.msra.mxu1 %v850_v2 }
  0x31   :  { %785 = vmatprep.subr.bf16.mxu0 %v851_v3  ;;  %830 = vmatprep.subr.bf16.mxu1 %v851_v3 }
  0x34   :  { %786 = vmatpush3.bf16.msra.mxu0 %v851_v3  ;;  %838 = vmatpush3.bf16.msra.mxu1 %v851_v3 }
  0x35   :  { %787 = vmatprep.subr.bf16.mxu0 %v852_v6  ;;  %831 = vmatprep.subr.bf16.mxu1 %v852_v6 }
  0x38   :  { %788 = vmatpush3.bf16.msra.mxu0 %v852_v6  ;;  %839 = vmatpush3.bf16.msra.mxu1 %v852_v6 }
  0x39   :  { %789 = vmatprep.subr.bf16.mxu0 %v853_v7  ;;  %832 = vmatprep.subr.bf16.mxu1 %v853_v7 }
  0x3c   :  { %790 = vmatpush3.bf16.msra.mxu0 %v853_v7  ;;  %840 = vmatpush3.bf16.msra.mxu1 %v853_v7 }
  0x3d   :  { %791 = vmatprep.subr.bf16.mxu0 %v854_v8  ;;  %833 = vmatprep.subr.bf16.mxu1 %v854_v8 }
  0x40   :  { %792 = vmatpush3.bf16.msra.mxu0 %v854_v8  ;;  %841 = vmatpush3.bf16.msra.mxu1 %v854_v8 }
  0x41   :  { %793 = vmatprep.subr.bf16.mxu0 %v855_v9  ;;  %834 = vmatprep.subr.bf16.mxu1 %v855_v9 }
  0x44   :  { %794 = vmatpush3.bf16.msra.mxu0 %v855_v9  ;;  %842 = vmatpush3.bf16.msra.mxu1 %v855_v9 }
  0x47   :  { %796 = vmatmul.mubr.bf16.vlgmr.msra.gmra.mrb[0].mxu0 %v858_v10  ;;  %812 = vmatmul.mubr.bf16.vlgmr.msra.gmra.mrb[0].mxu1 %v859_v11 }
  0x48   :  { %799 = vmatprep.mubr.bf16.mxu0 %v860_v12  ;;  %815 = vmatprep.mubr.bf16.mxu1 %v861_v13 }
  0x4f   :  { %800 = vmatmul.mubr.bf16.gmra.mrb[4].mxu0 %v862_v14  ;;  %816 = vmatmul.mubr.bf16.gmra.mrb[4].mxu1 %v863_v15 }
  0x50   :  { %803 = vmatprep.mubr.bf16.mxu0 %v864_v16  ;;  %819 = vmatprep.mubr.bf16.mxu1 %v865_v17 }
  0x57   :  { %804 = vmatmul.mubr.bf16.gmra.mrb[8].mxu0 %v866_v18  ;;  %820 = vmatmul.mubr.bf16.gmra.mrb[8].mxu1 %v867_v19 }
  0x58   :  { %807 = vmatprep.mubr.bf16.mxu0 %v868_v20  ;;  %823 = vmatprep.mubr.bf16.mxu1 %v869_v21 }
  0x5f   :  { %808 = vmatmul.mubr.bf16.gmra.mrb[12].mxu0 %v870_v22  ;;  %824 = vmatmul.mubr.bf16.gmra.mrb[12].mxu1 %v871_v23 }
 0x11a   :  { %v797_v24 = vpop.f32.mrb[0].mxu0  ;;  %v813_v25 = vpop.f32.mrb[0].mxu1 }
 0x11b   :  { %v267_v26 = vpop.f32.mrb[1].mxu0  ;;  %v331_v27 = vpop.f32.mrb[1].mxu1 }
 0x11c   :  { %v798_v28 = vpop.f32.mrb[2].mxu0  ;;  %v814_v29 = vpop.f32.mrb[2].mxu1 }
 0x11d   :  { %v668_v30 = vpack.c.bf16 %v798_v28, %v797_v24  ;;  %v708_v31 = vpack.c.bf16 %v814_v29, %v813_v25  ;;  %v270_v32 = vpop.f32.mrb[3].mxu0  ;;  %v334_v33 = vpop.f32.mrb[3].mxu1 }
 0x11e   :  { %v663_v34 = vpack.c.bf16 %v270_v32, %v267_v26  ;;  %v703_v35 = vpack.c.bf16 %v334_v33, %v331_v27 }
 0x11f   :  { %740 = vst [vmem:[#allocation7 + $0x8] sm:$0xff] %v668_v30   ;;  %748 = vst [vmem:[#allocation7 + $0x48] sm:$0xff] %v708_v31  }
 0x120   :  { %664 = vst [vmem:[#allocation7] sm:$0xff] %v663_v34   ;;  %747 = vst [vmem:[#allocation7 + $0x40] sm:$0xff] %v703_v35  }
 0x122   :  { %v801_v36 = vpop.f32.mrb[4].mxu0  ;;  %v817_v37 = vpop.f32.mrb[4].mxu1 }
 0x123   :  { %v283_v38 = vpop.f32.mrb[5].mxu0  ;;  %v347_v39 = vpop.f32.mrb[5].mxu1 }
 0x124   :  { %v802_v40 = vpop.f32.mrb[6].mxu0  ;;  %v818_v41 = vpop.f32.mrb[6].mxu1 }
 0x125   :  { %v678_v42 = vpack.c.bf16 %v802_v40, %v801_v36  ;;  %v718_v43 = vpack.c.bf16 %v818_v41, %v817_v37  ;;  %v286_v44 = vpop.f32.mrb[7].mxu0  ;;  %v350_v45 = vpop.f32.mrb[7].mxu1 }
 0x126   :  { %v673_v46 = vpack.c.bf16 %v286_v44, %v283_v38  ;;  %v713_v47 = vpack.c.bf16 %v350_v45, %v347_v39 }
 0x127   :  { %742 = vst [vmem:[#allocation7 + $0x18] sm:$0xff] %v678_v42   ;;  %750 = vst [vmem:[#allocation7 + $0x58] sm:$0xff] %v718_v43  }
 0x128   :  { %741 = vst [vmem:[#allocation7 + $0x10] sm:$0xff] %v673_v46   ;;  %749 = vst [vmem:[#allocation7 + $0x50] sm:$0xff] %v713_v47  }
 0x12a   :  { %v805_v48 = vpop.f32.mrb[8].mxu0  ;;  %v821_v49 = vpop.f32.mrb[8].mxu1 }
 0x12b   :  { %v299_v50 = vpop.f32.mrb[9].mxu0  ;;  %v363_v51 = vpop.f32.mrb[9].mxu1 }
 0x12c   :  { %v806_v52 = vpop.f32.mrb[10].mxu0  ;;  %v822_v53 = vpop.f32.mrb[10].mxu1 }
 0x12d   :  { %v688_v54 = vpack.c.bf16 %v806_v52, %v805_v48  ;;  %v728_v55 = vpack.c.bf16 %v822_v53, %v821_v49  ;;  %v302_v56 = vpop.f32.mrb[11].mxu0  ;;  %v366_v57 = vpop.f32.mrb[11].mxu1 }
 0x12e   :  { %v683_v58 = vpack.c.bf16 %v302_v56, %v299_v50  ;;  %v723_v59 = vpack.c.bf16 %v366_v57, %v363_v51 }
 0x12f   :  { %744 = vst [vmem:[#allocation7 + $0x28] sm:$0xff] %v688_v54   ;;  %752 = vst [vmem:[#allocation7 + $0x68] sm:$0xff] %v728_v55  }
 0x130   :  { %743 = vst [vmem:[#allocation7 + $0x20] sm:$0xff] %v683_v58   ;;  %751 = vst [vmem:[#allocation7 + $0x60] sm:$0xff] %v723_v59  }
 0x132   :  { %v809_v60 = vpop.f32.mrb[12].mxu0  ;;  %v825_v61 = vpop.f32.mrb[12].mxu1 }
 0x133   :  { %v315_v62 = vpop.f32.mrb[13].mxu0  ;;  %v379_v63 = vpop.f32.mrb[13].mxu1 }
 0x134   :  { %v810_v0 = vpop.f32.mrb[14].mxu0  ;;  %v826_v1 = vpop.f32.mrb[14].mxu1 }
 0x135   :  { %v698_v2 = vpack.c.bf16 %v810_v0, %v809_v60  ;;  %v738_v3 = vpack.c.bf16 %v826_v1, %v825_v61  ;;  %v318_v4 = vpop.f32.mrb[15].mxu0  ;;  %v382_v5 = vpop.f32.mrb[15].mxu1 }
 0x136   :  { %v693_v6 = vpack.c.bf16 %v318_v4, %v315_v62  ;;  %v733_v7 = vpack.c.bf16 %v382_v5, %v379_v63 }
 0x137   :  { %746 = vst [vmem:[#allocation7 + $0x38] sm:$0xff] %v698_v2   ;;  %754 = vst [vmem:[#allocation7 + $0x78] sm:$0xff] %v738_v3  }
 0x138   :  { %745 = vst [vmem:[#allocation7 + $0x30] sm:$0xff] %v693_v6   ;;  %753 = vst [vmem:[#allocation7 + $0x70] sm:$0xff] %v733_v7  }
 0x139   :  { %927 = shalt.err (!%p924_p6)
}
 0x13a   :  { %s928_s10 = scalar_lea.hbm %s1011_s2, 2048 }
 0x13b   :  { %p929_p7 = scmp.ne.s32.totalorder %s1011_s2, %s928_s10  ;;  %p932_p8 = scmp.lt.u32.totalorder %s928_s10, %s1011_s2 }
 0x13d   :  { %p934_p9 = pnand %p932_p8, %p929_p7 }
 0x13f   :  { %937 = shalt.err (!%p934_p9)
}
 0x140   :  { %565 = dma.vmem_to_hbm [thread:$0]  %s560_s6, 2048, %s1011_s2, [#allocation4], %s945_s19, %s945_s19, %s946_s20  }
 0x141   :  { %942 = dma.done.wait [#allocation4], 2048  }
 0x142   :  { %943 = vsyncadd [#allocation4], 4294965248 }
 0x143   :  { %569 = vsyncpa [#allocation3], 1 }
 0x144   :  { %570 = vsyncpa [#allocation6], 1 }
 0x145   :  { %571 = vsyncpa [#allocation4], 1 }

</bundles_post_ra>
